<compile_context>
chip_gen: v7x
topology: tpu7x:2x2x1
jax: 0.10.0
libtpu: 0.0.40
codegen_flags: <defaults>
</compile_context>

<pallas_src>
import jax
import jax.numpy as jnp
from jax.experimental import pallas as pl
from jax.experimental.pallas import tpu as pltpu


def rope_kernel(x_ref, cos_ref, sin_ref, o_ref):
    # Block shapes (batch dim squeezed): x_ref/o_ref -> (TN, D), tables -> (TN, D).
    x = x_ref[...].astype(jnp.float32)
    tn, d = x_ref.shape

    # Partner of lane l within its (even, odd) pair:
    #   even l -> x[l+1]  (roll left by 1);   odd l -> x[l-1]  (roll right by 1)
    left = pltpu.roll(x, shift=d - 1, axis=1)   # element l+1 lands at lane l
    right = pltpu.roll(x, shift=1, axis=1)      # element l-1 lands at lane l
    lane = jax.lax.broadcasted_iota(jnp.int32, (tn, d), 1)
    partner = jnp.where((lane & 1) == 0, left, right)

    # sin table already carries the -1/+1 even/odd sign:
    #   even lane:  cos*x[l] - sin*x[l+1]
    #   odd  lane:  cos*x[l] + sin*x[l-1]
    o_ref[...] = (cos_ref[...] * x + sin_ref[...] * partner).astype(o_ref.dtype)


def _rope_tables(n, d, base):
    """cos table and sign-folded sin table, shape (N, D), float32."""
    k_max = d // 2
    k = jnp.arange(k_max, dtype=jnp.float32)
    theta = jnp.exp(-(k / jnp.float32(k_max)) * jnp.log(jnp.float32(base)))
    pos = jnp.arange(n, dtype=jnp.float32)
    ang = pos[:, None] * theta[None, :]          # (N, k_max)
    ang = jnp.repeat(ang, 2, axis=1)             # (N, D): lane l uses pair l // 2
    cos_tab = jnp.cos(ang)
    sign = jnp.where((jnp.arange(d) % 2) == 0, -1.0, 1.0).astype(jnp.float32)
    sin_signed = jnp.sin(ang) * sign[None, :]
    return cos_tab, sin_signed


def _choose_tile_n(n, d, itemsize):
    """Largest sequence tile that divides N, is a multiple of 8, and keeps the
    double-buffered (x + out + 2 tables) footprint comfortably under the v7x
    scoped-VMEM default (~16 MiB budget here)."""
    budget = 16 * 1024 * 1024
    per_row = 2 * (2 * itemsize + 2 * 4) * d     # 2x buffering, 2 data + 2 f32 tables
    cap = min(max(8, budget // per_row), 1024)   # >=512 rows already ~85% of roofline
    if n <= cap:
        return n
    tn = (cap // 8) * 8
    while tn >= 8:
        if n % tn == 0:
            return tn
        tn -= 8
    return n  # no multiple-of-8 divisor; fall back to the full axis in one block


def rope_pallas(x, base=10000.0, tile_n=None):
    B, N, D = x.shape
    assert D % 2 == 0, "feature dim must be even"

    cos_tab, sin_tab = _rope_tables(N, D, float(base))

    tn = tile_n if tile_n is not None else _choose_tile_n(N, D, x.dtype.itemsize)
    assert N % tn == 0, "tile_n must divide the sequence length"
    n_tiles = N // tn

    # Grid: (sequence tiles, batch).  Batch innermost so the table blocks
    # (index depends only on the sequence tile) are reused without re-DMA.
    return pl.pallas_call(
        rope_kernel,
        out_shape=jax.ShapeDtypeStruct((B, N, D), x.dtype),
        grid=(n_tiles, B),
        in_specs=[
            pl.BlockSpec((None, tn, D), lambda n, b: (b, n, 0)),  # x (batch squeezed)
            pl.BlockSpec((tn, D), lambda n, b: (n, 0)),           # cos table
            pl.BlockSpec((tn, D), lambda n, b: (n, 0)),           # signed sin table
        ],
        out_specs=pl.BlockSpec((None, tn, D), lambda n, b: (b, n, 0)),
        compiler_params=pltpu.CompilerParams(
            dimension_semantics=("parallel", "parallel")),
    )(x, cos_tab, sin_tab)


def rope_ref(x, base=10000.0):
    # Pure-JAX reference mirroring the PyTorch module (f32 angle math).
    B, N, D = x.shape
    k_max = D // 2
    theta = 1.0 / (base ** (jnp.arange(k_max, dtype=jnp.float32) / k_max))
    angles = jnp.arange(N, dtype=jnp.float32)[:, None] * theta    # (N, k_max)
    c, s = jnp.cos(angles), jnp.sin(angles)
    xr = x.astype(jnp.float32).reshape(B, N, k_max, 2)
    re = c * xr[..., 0] - s * xr[..., 1]
    im = s * xr[..., 0] + c * xr[..., 1]
    return jnp.stack([re, im], axis=-1).reshape(B, N, D).astype(x.dtype)


if __name__ == "__main__":
    # Small demo shape implied by the module's forward: (batch, seq, hidden).
    key = jax.random.PRNGKey(0)
    B, N, D = 2, 8, 32
    x = jax.random.normal(key, (B, N, D), dtype=jnp.float32)

    out = jax.block_until_ready(rope_pallas(x, base=10000.0))
    ref = rope_ref(x, base=10000.0)
    assert out.shape == (B, N, D)
    assert jnp.allclose(out, ref, atol=1e-4, rtol=1e-4), "mismatch vs reference"

    # Exercise the tiled multi-grid-step path with a lane-dense, multi-vreg
    # feature dim (D > 128 so lane rolls span vreg boundaries).
    B2, N2, D2 = 2, 64, 256
    x2 = jax.random.normal(jax.random.PRNGKey(1), (B2, N2, D2), dtype=jnp.float32)
    out2 = jax.block_until_ready(rope_pallas(x2, base=10000.0, tile_n=32))
    ref2 = rope_ref(x2, base=10000.0)
    assert jnp.allclose(out2, ref2, atol=1e-4, rtol=1e-4), "tiled mismatch vs reference"

    print("KERNEL_OK")
</pallas_src>

<mosaic_0001>
module attributes {stable_mosaic.version = 11 : i64} {
  func.func @rope_kernel(%arg0: i32, %arg1: i32, %arg2: memref<1x8x32xf32, #tpu.memory_space<vmem>>, %arg3: memref<8x32xf32, #tpu.memory_space<vmem>>, %arg4: memref<8x32xf32, #tpu.memory_space<vmem>>, %arg5: memref<1x8x32xf32, #tpu.memory_space<vmem>>) attributes {dimension_semantics = [#tpu.dimension_semantics<parallel>, #tpu.dimension_semantics<parallel>], iteration_bounds = array<i64: 1, 2>, scalar_prefetch = 0 : i64, scratch_operands = 0 : i64, tpu.core_type = #tpu.core_type<tc>, window_params = [{transform_indices = @transform_0, window_bounds = array<i64: 1, 8, 32>}, {transform_indices = @transform_1, window_bounds = array<i64: 8, 32>}, {transform_indices = @transform_2, window_bounds = array<i64: 8, 32>}, {transform_indices = @transform_3, window_bounds = array<i64: 1, 8, 32>}]} {
    %c0 = arith.constant 0 : index
    %c0_0 = arith.constant 0 : index
    %c0_1 = arith.constant 0 : index
    %0 = vector.load %arg2[%c0, %c0_0, %c0_1] : memref<1x8x32xf32, #tpu.memory_space<vmem>>, vector<1x8x32xf32>
    %1 = vector.shape_cast %0 : vector<1x8x32xf32> to vector<8x32xf32>
    %c31_i32 = arith.constant 31 : i32
    %2 = tpu.dynamic_rotate %1 by %c31_i32 dim 1 : vector<8x32xf32>, i32 -> vector<8x32xf32>
    %c1_i32 = arith.constant 1 : i32
    %3 = tpu.dynamic_rotate %1 by %c1_i32 dim 1 : vector<8x32xf32>, i32 -> vector<8x32xf32>
    %4 = tpu.iota {dimensions = array<i32: 1>} : vector<8x32xi32>
    %c1_i32_2 = arith.constant 1 : i32
    %5 = vector.broadcast %c1_i32_2 : i32 to vector<8x32xi32>
    %6 = arith.andi %4, %5 : vector<8x32xi32>
    %c0_i32 = arith.constant 0 : i32
    %7 = vector.broadcast %c0_i32 : i32 to vector<8x32xi32>
    %8 = arith.cmpi eq, %6, %7 : vector<8x32xi32>
    %9 = arith.select %8, %2, %3 : vector<8x32xi1>, vector<8x32xf32>
    %c0_3 = arith.constant 0 : index
    %c0_4 = arith.constant 0 : index
    %10 = vector.load %arg3[%c0_3, %c0_4] : memref<8x32xf32, #tpu.memory_space<vmem>>, vector<8x32xf32>
    %11 = arith.mulf %10, %1 : vector<8x32xf32>
    %c0_5 = arith.constant 0 : index
    %c0_6 = arith.constant 0 : index
    %12 = vector.load %arg4[%c0_5, %c0_6] : memref<8x32xf32, #tpu.memory_space<vmem>>, vector<8x32xf32>
    %13 = arith.mulf %12, %9 : vector<8x32xf32>
    %14 = arith.addf %11, %13 : vector<8x32xf32>
    %c0_7 = arith.constant 0 : index
    %c0_8 = arith.constant 0 : index
    %c0_9 = arith.constant 0 : index
    %15 = vector.load %arg5[%c0_7, %c0_8, %c0_9] : memref<1x8x32xf32, #tpu.memory_space<vmem>>, vector<1x8x32xf32>
    %16 = vector.shape_cast %15 : vector<1x8x32xf32> to vector<8x32xf32>
    %17 = vector.shape_cast %14 : vector<8x32xf32> to vector<1x8x32xf32>
    tpu.vector_store %arg5[%c0_7, %c0_8, %c0_9], %17 {strides = array<i32>} : memref<1x8x32xf32, #tpu.memory_space<vmem>>, vector<1x8x32xf32>,
    return
  }
  func.func @transform_0(%arg0: i32, %arg1: i32) -> (i32, i32, i32) {
    %c0_i32 = arith.constant 0 : i32
    %c0_i32_0 = arith.constant 0 : i32
    return %arg1, %arg0, %c0_i32 : i32, i32, i32
  }
  func.func @transform_1(%arg0: i32, %arg1: i32) -> (i32, i32) {
    %c0_i32 = arith.constant 0 : i32
    %c0_i32_0 = arith.constant 0 : i32
    return %arg0, %c0_i32 : i32, i32
  }
  func.func @transform_2(%arg0: i32, %arg1: i32) -> (i32, i32) {
    %c0_i32 = arith.constant 0 : i32
    %c0_i32_0 = arith.constant 0 : i32
    return %arg0, %c0_i32 : i32, i32
  }
  func.func @transform_3(%arg0: i32, %arg1: i32) -> (i32, i32, i32) {
    %c0_i32 = arith.constant 0 : i32
    %c0_i32_0 = arith.constant 0 : i32
    return %arg1, %arg0, %c0_i32 : i32, i32, i32
  }
}

</mosaic_0001>

<bundles_post_ra>
// kernel: tpu_custom_call.1
= control target key start
LH: loop header
LB: loop body
LE: loop exit
PB: predicated region body
PF: predicated region fallthrough
CT: control target
= control target key end

     0   :  { %8 = vsyncpa [#allocation3], 0  ;;  %s938_s0 = inlined_call_operand.hbm [shape: f32[2,8,32], index: 0, kind: input, shape index: {}]   ;;  %s939_s1 = inlined_call_operand.hbm [shape: f32[8,32], index: 1, kind: input, shape index: {}]   ;;  %s940_s2 = inlined_call_operand.hbm [shape: f32[8,32], index: 2, kind: input, shape index: {}]   ;;  %s941_s3 = inlined_call_operand.hbm [shape: f32[2,8,32], index: 3, kind: output, shape index: {}]  }
   0x1   :  { %10 = vsyncpa [#allocation3 + $0x1], 0 }
   0x2   :  { %11 = vsyncpa [#allocation6], 0 }
   0x3   :  { %12 = vsyncpa [#allocation4], 0 }
   0x4   :  { %14 = vsyncpa [#allocation4 + $0x1], 0  ;;  %s691_s12 = smov 0   ;;  %s693_s13 = smov 0  }
   0x5   :  { %s695_s14 = smov 0   ;;  %s697_s15 = smov 0  }
   0x6   :  { %s699_s16 = smov 0   ;;  %s701_s17 = smov 0  }
   0x7 LB: > { %s387_s18 = sadd.s32 4294967295, %s662_s17   ;;  %s388_s19 = sadd.s32 4294967294, %s662_s17   ;;  %s662_s17 = sphi %s701_s17, %s20_s17   ;;  %s658_s16 = sphi %s699_s16, %s964_s16   ;;  %s654_s15 = sphi %s697_s15, %s963_s15   ;;  %s650_s14 = sphi %s695_s14, %s962_s14   ;;  %s646_s13 = sphi %s693_s13, %s961_s13   ;;  %s642_s12 = sphi %s691_s12, %s960_s12  }
   0x8   : > { %p54_p0 = scmp.ne.s32.totalorder %s646_s13, %s642_s12  ;;  %p725_p1 = scmp.eq.s32.totalorder %s387_s18, 0 }
   0x9   : > { %p729_p2 = scmp.eq.s32.totalorder %s387_s18, 1  ;;  %p138_p3 = scmp.eq.s32.totalorder %s388_s19, 1 }
   0xa   : > { %s946_s20 = scalar_select %p725_p1, 1, 0 }
   0xb   : > { %s947_s21 = scalar_select %p729_p2, 1, 0 }
   0xc   : > { %p735_p4 = por %p725_p1, %p54_p0  ;;  %p389_p5 = scmp.ge.s32.totalorder %s662_s17, 1 }
   0xd   : > { %p740_p6 = por %p138_p3, %p54_p0  ;;  %p145_p7 = scmp.lt.s32.totalorder %s662_s17, 3 }
   0xe   : > { %s948_s22 = scalar_select %p735_p4, 1, 0 }
   0xf   : > { %s949_s23 = scalar_select %p740_p6, 1, 0 }
  0x10   : > { %p745_p8 = pnand %p389_p5, %p145_p7  ;;  %s664_s25 = smov [#allocation5]  }
  0x11   : > { %s160_s26 = sshll.u32 %s664_s25, 4  ;;  %s665_s27 = smov [#allocation7]   ;;  %s161_s26 = int_to_ptr.vmem [resolvable:$true] %s160_s26 }
  0x12   : > { %s950_s24 = scalar_select %p745_p8, 1, 0 }
  0x13   : > { %p416_p10 = pneg %p745_p8  ;;  %s173_s28 = sshll.u32 %s665_s27, 4  ;;  %s758_s28 = int_to_ptr.vmem [resolvable:$true] %s173_s28 }
  0x14   : > { %s490_s5 = scalar_lea.hbm %s939_s1, 128 }
  0x15   : > { %p754_p11 = pnand %p416_p10, %p725_p1  ;;  %p491_p12 = scmp.ne.s32.totalorder %s939_s1, %s490_s5 }
  0x16   : > { %p497_p5 = scmp.lt.u32.totalorder %s490_s5, %s939_s1 }
  0x17   : > { %p492_p13 = pneg %p754_p11 }
  0x19   : > { %p493_p0 = pnand %p492_p13, %p491_p12 }
  0x1b   : > { %p494_p3 = pneg %p493_p0 }
  0x1d   : > { %p499_p7 = pnand %p497_p5, %p494_p3 }
  0x1f   : > { %502 = shalt.err (!%p499_p7)
}
  0x20   : > { %s503_s10 = scalar_lea.vmem %s161_s26, 128  ;;  %p511_p1 = scmp.lt.s32.totalorder %s161_s26, %s161_s26 }
  0x21   : > { %p504_p10 = scmp.ne.s32.totalorder %s161_s26, %s503_s10  ;;  %p512_p4 = scmp.lt.s32.totalorder %s503_s10, %s503_s10 }
  0x23   : > { %p506_p9 = pnand %p504_p10, %p492_p13  ;;  %p513_p8 = por %p512_p4, %p511_p1 }
  0x25   : > { %p507_p6 = pneg %p506_p9 }
  0x27   : > { %p514_p2 = pnand %p513_p8, %p507_p6 }
  0x29   : > { %517 = shalt.err (!%p514_p2)
}
  0x2a   : > { %419 = dma.hbm_to_vmem [thread:$0]  (!%p754_p11), %s939_s1, 128, %s161_s26, [#allocation6]  }
  0x2b   : > { %s518_s27 = scalar_lea.hbm %s940_s2, 128 }
  0x2c   : > { %p519_p9 = scmp.ne.s32.totalorder %s940_s2, %s518_s27  ;;  %p525_p2 = scmp.lt.u32.totalorder %s518_s27, %s940_s2 }
  0x2e   : > { %p521_p1 = pnand %p519_p9, %p492_p13 }
  0x30   : > { %p522_p4 = pneg %p521_p1 }
  0x32   : > { %p527_p6 = pnand %p525_p2, %p522_p4 }
  0x34   : > { %530 = shalt.err (!%p527_p6)
}
  0x35   : > { %s531_s26 = scalar_lea.vmem %s758_s28, 128  ;;  %p539_p3 = scmp.lt.s32.totalorder %s758_s28, %s758_s28 }
  0x36   : > { %p532_p8 = scmp.ne.s32.totalorder %s758_s28, %s531_s26  ;;  %p540_p5 = scmp.lt.s32.totalorder %s531_s26, %s531_s26 }
  0x38   : > { %p534_p12 = pnand %p532_p8, %p492_p13  ;;  %p541_p7 = por %p540_p5, %p539_p3 }
  0x3a   : > { %p535_p0 = pneg %p534_p12 }
  0x3c   : > { %p542_p10 = pnand %p541_p7, %p535_p0 }
  0x3e   : > { %545 = shalt.err (!%p542_p10)
}
  0x3f   : > { %422 = dma.hbm_to_vmem [thread:$0]  (!%p754_p11), %s940_s2, 128, %s758_s28, [#allocation6]  }
  0x40   : > { %s29_s9 = sadd.s32 1, %s658_s16  ;;  %s41_s10 = sadd.s32 1, %s650_s14 }
  0x41   : > { %p30_p13 = scmp.ge.s32.totalorder %s29_s9, 2  ;;  %p48_p9 = scmp.ne.s32.totalorder %s650_s14, %s646_s13 }
  0x42   : > { %p49_p1 = scmp.eq.s32.totalorder %s662_s17, 0  ;;  %p433_p4 = scmp.lt.s32.totalorder %s662_s17, 2 }
  0x43   : > { %s966_s9 = smov (%p30_p13, %s29_s9), 0  ;;  %p952_p6 = scmp.ne.s32.totalorder %s947_s21, 0 }
  0x44   : > { %p50_p2 = por %p49_p1, %p48_p9  ;;  %s36_s11 = ssub.s32 %s658_s16, %s966_s9 }
  0x45   : > { %p817_p8 = por %p952_p6, %p48_p9  ;;  %s184_s18 = sand.u32 1, %s650_s14  }
  0x46   : > { %p39_p12 = scmp.eq.s32.totalorder %s36_s11, 0  ;;  %s393_s28 = sshll.u32 %s184_s18, 3 }
  0x47   : > { %s394_s19 = sshll.u32 %s658_s16, 7  ;;  %s188_s21 = scalar_lea.vmem [#allocation2], %s393_s28 }
  0x48   : > { %s826_s25 = scalar_select %p39_p12, %s650_s14, %s41_s10  }
  0x49   : > { %s831_s4 = scalar_lea.hbm %s938_s0, %s394_s19  ;;  %s196_s5 = sshll.u32 %s188_s21, 4  ;;  %s839_s5 = int_to_ptr.vmem [resolvable:$true] %s196_s5 }
  0x4a   : > { %p835_p11 = pnand %p433_p4, %p50_p2  ;;  %s185_s26 = scalar_lea.sflag [#allocation3], %s184_s18 }
  0x4b   : > { %s546_s7 = scalar_lea.hbm %s831_s4, 128  ;;  %s551_s11 = scalar_lea.hbm %s938_s0, 256 }
  0x4c   : > { %p547_p0 = scmp.ne.s32.totalorder %s831_s4, %s546_s7  ;;  %p548_p3 = pneg %p835_p11 }
  0x4d   : > { %p552_p10 = scmp.lt.u32.totalorder %s831_s4, %s938_s0  ;;  %p553_p13 = scmp.lt.u32.totalorder %s551_s11, %s546_s7 }
  0x4e   : > { %p549_p5 = pnand %p548_p3, %p547_p0  ;;  %p555_p1 = scmp.lt.u32.totalorder %s546_s7, %s831_s4 }
  0x4f   : > { %p554_p9 = por %p553_p13, %p552_p10 }
  0x50   : > { %p550_p7 = pneg %p549_p5 }
  0x51   : > { %p556_p4 = por %p555_p1, %p554_p9 }
  0x53   : > { %p557_p2 = pnand %p556_p4, %p550_p7 }
  0x55   : > { %560 = shalt.err (!%p557_p2)
}
  0x56   : > { %s561_s18 = scalar_lea.vmem %s839_s5, 128  ;;  %s666_s27 = smov [#allocation2]  }
  0x57   : > { %p562_p6 = scmp.ne.s32.totalorder %s839_s5, %s561_s18  ;;  %s566_s30 = sshll.u32 %s666_s27, 4  ;;  %s567_s30 = int_to_ptr.vmem [resolvable:$false] %s566_s30 }
  0x58   : > { %s568_s21 = scalar_lea.vmem %s567_s30, 256  ;;  %p569_p5 = scmp.lt.s32.totalorder %s839_s5, %s567_s30 }
  0x59   : > { %p564_p12 = pnand %p562_p6, %p548_p3  ;;  %p570_p10 = scmp.lt.s32.totalorder %s568_s21, %s561_s18 }
  0x5b   : > { %p565_p0 = pneg %p564_p12  ;;  %p571_p13 = por %p570_p10, %p569_p5 }
  0x5d   : > { %p572_p9 = pnand %p571_p13, %p565_p0 }
  0x5f   : > { %575 = shalt.err (!%p572_p9)
}
  0x60   : > { %426 = dma.hbm_to_vmem [thread:$0]  (!%p835_p11), %s831_s4, 128, %s839_s5, %s185_s26  }
  0x61   : > { %p955_p7 = scmp.ne.s32.totalorder %s950_s24, 0 }
  0x62   : > { %s869_s7 = sand.u32 (!%p955_p7), 1, %s646_s13   ;;  %p956_p3 = scmp.ne.s32.totalorder (!%p955_p7), %s948_s22, 0 }
  0x63   : > { %205 = sbr.rel (%p955_p7) target bundleno = 481 (0x1e1), region = 32  ;;  %s396_s8 = sshll.u32 (!%p955_p7), %s869_s7, 3 }
  0x64   : > { %s208_s10 = scalar_lea.sflag (!%p955_p7), [#allocation3], %s869_s7  ;;  %s211_s11 = scalar_lea.vmem (!%p955_p7), [#allocation2], %s396_s8 }
  0x6a   : > { %629 = dma.done.wait (%p956_p3), %s208_s10, 128  }
  0x6b   : > { %631 = vsyncadd (%p956_p3), %s208_s10, 4294967168  ;;  %p957_p11 = scmp.ne.s32.totalorder %s946_s20, 0 }
  0x6d   : > { %633 = dma.done.wait (%p957_p11), [#allocation6], 256  }
  0x6e   : > { %635 = vsyncadd (%p957_p11), [#allocation6], 4294967040  ;;  %v242_v0 = vld [vmem:[%s211_s11] sm:$0xff]  ;;  %s667_s24 = smov 32   ;;  %vm243_vm0 = vcmask 1047808   ;;  %s668_s4 = smov 127   ;;  %v250_v5 = vlaneseq }
  0x6f   : > { %244 = vrot.lane.b32.xlu0 %v242_v0, %s667_s24  ;;  %s669_s22 = smov 97   ;;  %v262_v9 = vld [vmem:[#allocation5] sm:$0xff]  ;;  %v264_v10 = vld [vmem:[#allocation7] sm:$0xff]  ;;  %s401_s20 = sshll.u32 %s654_s15, 7  ;;  %vm267_vm2 = vcmask 261120  }
  0x70   : > { %v251_v6 = vand.u32 127, %v250_v5  ;;  %v263_v12 = vmul.f32 %v262_v9, %v242_v0  ;;  %s241_s5 = scalar_lea.vmem [#allocation8], %s396_s8  ;;  %s889_s19 = scalar_lea.hbm %s941_s3, %s401_s20 }
  0x71   : > { %s284_s6 = sshll.u32 %s241_s5, 4  ;;  %s270_s18 = scalar_lea.sflag [#allocation4], %s869_s7  ;;  %s891_s6 = int_to_ptr.vmem [resolvable:$true] %s284_s6 }
  0x72   : > { %v252_v7 = vand.u32 1, %v251_v6  ;;  %s576_s27 = scalar_lea.vmem %s891_s6, 128  ;;  %s670_s15 = smov [#allocation8]  }
  0x73   : > { %p577_p1 = scmp.ne.s32.totalorder %s891_s6, %s576_s27  ;;  %s580_s30 = sshll.u32 %s670_s15, 4  ;;  %s581_s30 = int_to_ptr.vmem [resolvable:$false] %s580_s30 }
  0x74   : > { %vm253_vm1 = vcmp.eq.s32.totalorder %v252_v7, 0  ;;  %s582_s21 = scalar_lea.vmem %s581_s30, 256  ;;  %p583_p6 = scmp.lt.s32.totalorder %s891_s6, %s581_s30 }
  0x75   : > { %p578_p4 = pnand %p577_p1, %p817_p8  ;;  %p584_p12 = scmp.lt.s32.totalorder %s582_s21, %s576_s27 }
  0x77   : > { %p579_p2 = pneg %p578_p4  ;;  %p585_p0 = por %p584_p12, %p583_p6 }
  0x79   : > { %p586_p5 = pnand %p585_p0, %p579_p2 }
  0xe1   : > { %v245_v1 = vpop.permute.xlu0 %244 }
  0xe2   : > { %v246_v2 = vsel %vm243_vm0, %v245_v1, %v242_v0 }
  0xe3   : > { %247 = vrot.lane.b32.xlu0 %v246_v2, %s667_s24 }
 0x155   : > { %v248_v3 = vpop.permute.xlu0 %247 }
 0x156   : > { %v249_v4 = vsel %vm243_vm0, %v248_v3, %v242_v0 }
 0x157   : > { %255 = vrot.lane.b32.xlu1 %v249_v4, %s668_s4 }
 0x15b   : > { %258 = vrot.lane.b32.xlu1 %v249_v4, %s669_s22 }
 0x1c9   : > { %v256_v8 = vpop.permute.xlu1 %255 }
 0x1cd   : > { %v259_v11 = vpop.permute.xlu1 %258 }
 0x1ce   : > { %v261_v13 = vsel %vm253_vm1, %v256_v8, %v259_v11 }
 0x1cf   : > { %v265_v14 = vmul.f32 %v264_v10, %v261_v13 }
 0x1d1   : > { %v266_v15 = vadd.f32 %v265_v14, %v263_v12 }
 0x1d3   : > { %268 = vst.msk [vmem:[%s241_s5] sm:$0xff] %vm267_vm2, %v266_v15 }
 0x1d4   : > { %589 = shalt.err (!%p586_p5)
}
 0x1d5   : > { %s590_s7 = scalar_lea.hbm %s889_s19, 128  ;;  %s594_s11 = scalar_lea.hbm %s941_s3, 256 }
 0x1d6   : > { %p591_p10 = scmp.ne.s32.totalorder %s889_s19, %s590_s7  ;;  %p595_p7 = scmp.lt.u32.totalorder %s889_s19, %s941_s3 }
 0x1d7   : > { %p596_p3 = scmp.lt.u32.totalorder %s594_s11, %s590_s7  ;;  %p598_p1 = scmp.lt.u32.totalorder %s590_s7, %s889_s19 }
 0x1d8   : > { %p592_p13 = pnand %p591_p10, %p817_p8 }
 0x1d9   : > { %p597_p11 = por %p596_p3, %p595_p7 }
 0x1da   : > { %p593_p9 = pneg %p592_p13 }
 0x1db   : > { %p599_p4 = por %p598_p1, %p597_p11 }
 0x1dd   : > { %p600_p2 = pnand %p599_p4, %p593_p9 }
 0x1df   : > { %603 = shalt.err (!%p600_p2)
}
 0x1e0   : > { %414 = dma.vmem_to_hbm [thread:$0]  (%p817_p8), %s891_s6, 128, %s889_s19, %s270_s18  }
 0x1e1 PF: > { %s296_s22 = sand.u32 1, %s642_s12   ;;  %p958_p6 = scmp.ne.s32.totalorder %s949_s23, 0 }
 0x1e2   : > { %p959_p12 = scmp.ge.s32.totalorder %s662_s17, 2  ;;  %s297_s20 = scalar_lea.sflag [#allocation4], %s296_s22 }
 0x1e4   : > { %p428_p0 = pnand %p959_p12, %p958_p6 }
 0x1e6   : > { %637 = dma.done.wait (!%p428_p0), %s297_s20, 128  }
 0x1e7   : > { %639 = vsyncadd (!%p428_p0), %s297_s20, 4294967168  ;;  %s20_s17 = sadd.s32 1, %s662_s17   ;;  %s960_s12 = smov %s646_s13 }
 0x1e8   : > { %p17_p5 = scmp.ge.s32.totalorder %s20_s17, 4   ;;  %s961_s13 = smov %s650_s14 }
 0x1e9   : > { %s962_s14 = smov %s826_s25  ;;  %s963_s15 = smov %s658_s16 }
 0x1ea   : > { %s964_s16 = smov %s966_s9  ;;  %19 = sbr.rel (!%p17_p5) target bundleno = 7 (0x7), region = 87 }
 0x1f1   :  { %302 = vsyncpa [#allocation3], 1 }
 0x1f2   :  { %304 = vsyncpa [#allocation3 + $0x1], 1 }
 0x1f3   :  { %305 = vsyncpa [#allocation6], 1 }
 0x1f4   :  { %306 = vsyncpa [#allocation4], 1 }
 0x1f5   :  { %308 = vsyncpa [#allocation4 + $0x1], 1 }

</bundles_post_ra>
